<compile_context>
chip_gen: v6e
topology: v6e:2x2x1
jax: 0.10.0
libtpu: 0.0.40
codegen_flags: <defaults>
</compile_context>

<pallas_src>
import functools

import jax
import jax.numpy as jnp
from jax.experimental import pallas as pl
from jax.experimental.pallas import tpu as pltpu

_LANE = 128
_SUBLANE = 8


def _round_up(n, m):
    return (n + m - 1) // m * m


def _policy_kernel(x_ref, w1_ref, b1_ref, w2_ref, b2_ref, beta_ref, o_ref):
    """out = swish(x @ W1 + b1) @ W2p + b2p, with swish(z) = z * sigmoid(beta*z)."""
    x = x_ref[...]                                             # (TILE_B, 27)
    # fc1 on the MXU with f32 accumulation; bias is a broadcast VPU add.
    h = jnp.dot(x, w1_ref[...], preferred_element_type=jnp.float32) + b1_ref[...]
    # Swish in f32 (EUP sigmoid + VPU mul); beta is read from SMEM.
    beta = beta_ref[0, 0]
    h = h * jax.nn.sigmoid(beta * h)
    # fc2 into a lane-dense (TILE_B, 128) tile (padded columns are zero).
    out = jnp.dot(h.astype(w2_ref.dtype), w2_ref[...],
                  preferred_element_type=jnp.float32) + b2_ref[...]
    o_ref[...] = out.astype(o_ref.dtype)


def prepare_params(w1, b1, w2, b2, beta, *, dtype=jnp.float32):
    """One-time prep from PyTorch nn.Linear layout to kernel layout.

    w1: (hidden, in), b1: (hidden,), w2: (out, hidden), b2: (out,), beta: scalar.
    Returns (w1_t, b1_r, w2_padded, b2_padded, beta_smem).
    Use dtype=jnp.bfloat16 for large-batch inference (v6e/v7x MXU); f32 default.
    """
    hidden, _ = w1.shape
    out_size = w2.shape[0]
    out_padded = _round_up(out_size, _LANE)

    w1_t = jnp.asarray(w1, dtype).T                              # (in, hidden)
    b1_r = jnp.asarray(b1, jnp.float32).reshape(1, hidden)       # (1, hidden)
    w2_t = jnp.asarray(w2, dtype).T                              # (hidden, out)
    w2_p = jnp.zeros((hidden, out_padded), dtype).at[:, :out_size].set(w2_t)
    b2_p = jnp.zeros((1, out_padded), jnp.float32).at[:, :out_size].set(
        jnp.asarray(b2, jnp.float32))
    beta_s = jnp.asarray(beta, jnp.float32).reshape(1, 1)        # SMEM scalar
    return w1_t, b1_r, w2_p, b2_p, beta_s


def policy_forward(x, w1_t, b1_r, w2_p, b2_p, beta_s, *, out_size, tile_b=1024):
    """x: (B, in_size) -> (B, out_size). Params come from prepare_params()."""
    B, in_size = x.shape
    hidden = w1_t.shape[1]
    out_padded = w2_p.shape[1]

    x = x.astype(w1_t.dtype)

    # Batch tiling: largest sublane-aligned tile <= tile_b; pad batch to a multiple.
    tb = min(tile_b, _round_up(B, _SUBLANE))
    b_pad = _round_up(B, tb)
    if b_pad != B:
        x = jnp.pad(x, ((0, b_pad - B), (0, 0)))
    n_tiles = b_pad // tb

    out = pl.pallas_call(
        _policy_kernel,
        out_shape=jax.ShapeDtypeStruct((b_pad, out_padded), jnp.float32),
        grid=(n_tiles,),
        in_specs=[
            pl.BlockSpec((tb, in_size), lambda i: (i, 0)),         # x: tiled on batch
            pl.BlockSpec((in_size, hidden), lambda i: (0, 0)),     # W1: resident
            pl.BlockSpec((1, hidden), lambda i: (0, 0)),           # b1: resident
            pl.BlockSpec((hidden, out_padded), lambda i: (0, 0)),  # W2 (padded): resident
            pl.BlockSpec((1, out_padded), lambda i: (0, 0)),       # b2 (padded): resident
            pl.BlockSpec(memory_space=pltpu.SMEM),                 # beta: SMEM scalar
        ],
        out_specs=pl.BlockSpec((tb, out_padded), lambda i: (i, 0)),
        compiler_params=pltpu.CompilerParams(
            dimension_semantics=("parallel",)),
    )(x, w1_t, b1_r, w2_p, b2_p, beta_s)

    # Drop batch padding and the lane padding of fc2.
    return out[:B, :out_size]


def _reference(x, w1, b1, w2, b2, beta):
    h = x @ w1.T + b1
    h = h * jax.nn.sigmoid(beta * h)
    return h @ w2.T + b2


if __name__ == "__main__":
    input_size, hidden_size, output_size = 27, 64, 9
    batch = 8

    key = jax.random.PRNGKey(0)
    kx, k1, kb1, k2, kb2 = jax.random.split(key, 5)

    # Deterministic init mimicking nn.Linear default (U[-1/sqrt(fan_in), +]).
    lim1 = 1.0 / jnp.sqrt(jnp.float32(input_size))
    lim2 = 1.0 / jnp.sqrt(jnp.float32(hidden_size))
    w1 = jax.random.uniform(k1, (hidden_size, input_size), jnp.float32, -lim1, lim1)
    b1 = jax.random.uniform(kb1, (hidden_size,), jnp.float32, -lim1, lim1)
    w2 = jax.random.uniform(k2, (output_size, hidden_size), jnp.float32, -lim2, lim2)
    b2 = jax.random.uniform(kb2, (output_size,), jnp.float32, -lim2, lim2)
    beta = jnp.float32(1.0)  # Swish beta (non-trainable in the reference)

    x = jax.random.uniform(kx, (batch, input_size), jnp.float32)

    # One-time parameter prep (no per-call transposes/reshapes), jitted forward.
    params = prepare_params(w1, b1, w2, b2, beta)
    fwd = jax.jit(functools.partial(policy_forward, out_size=output_size))

    out = fwd(x, *params)
    jax.block_until_ready(out)

    ref = _reference(x, w1, b1, w2, b2, beta)
    assert out.shape == (batch, output_size)
    assert jnp.allclose(out, ref, atol=1e-5, rtol=1e-5), "mismatch vs reference"

    print("KERNEL_OK")
</pallas_src>

<mosaic_0001>
module attributes {stable_mosaic.version = 11 : i64} {
  func.func @_policy_kernel(%arg0: i32, %arg1: memref<8x27xf32, #tpu.memory_space<vmem>>, %arg2: memref<27x64xf32, #tpu.memory_space<vmem>>, %arg3: memref<1x64xf32, #tpu.memory_space<vmem>>, %arg4: memref<64x128xf32, #tpu.memory_space<vmem>>, %arg5: memref<1x128xf32, #tpu.memory_space<vmem>>, %arg6: memref<1x1xf32, #tpu.memory_space<smem>>, %arg7: memref<8x128xf32, #tpu.memory_space<vmem>>) attributes {dimension_semantics = [#tpu.dimension_semantics<parallel>], iteration_bounds = array<i64: 1>, scalar_prefetch = 0 : i64, scratch_operands = 0 : i64, tpu.core_type = #tpu.core_type<tc>, window_params = [{transform_indices = @transform_0, window_bounds = array<i64: 8, 27>}, {pipeline_mode = #tpu.pipeline_mode<synchronous>, transform_indices = @transform_1, window_bounds = array<i64: 27, 64>}, {pipeline_mode = #tpu.pipeline_mode<synchronous>, transform_indices = @transform_2, window_bounds = array<i64: 1, 64>}, {pipeline_mode = #tpu.pipeline_mode<synchronous>, transform_indices = @transform_3, window_bounds = array<i64: 64, 128>}, {pipeline_mode = #tpu.pipeline_mode<synchronous>, transform_indices = @transform_4, window_bounds = array<i64: 1, 128>}, {transform_indices = @transform_5, window_bounds = array<i64: 1, 1>}, {transform_indices = @transform_6, window_bounds = array<i64: 8, 128>}]} {
    %c0 = arith.constant 0 : index
    %c0_0 = arith.constant 0 : index
    %0 = vector.load %arg1[%c0, %c0_0] : memref<8x27xf32, #tpu.memory_space<vmem>>, vector<8x27xf32>
    %c0_1 = arith.constant 0 : index
    %c0_2 = arith.constant 0 : index
    %1 = vector.load %arg2[%c0_1, %c0_2] : memref<27x64xf32, #tpu.memory_space<vmem>>, vector<27x64xf32>
    %cst = arith.constant dense<0.000000e+00> : vector<8x64xf32>
    %2 = tpu.matmul %0, %1, %cst {dimension_numbers = #tpu.dot_dimension_numbers<[1], [0], [0], [1], [0, 0, 1, 1], [], []>} : vector<8x27xf32>, vector<27x64xf32>, vector<8x64xf32> -> vector<8x64xf32>
    %c0_3 = arith.constant 0 : index
    %c0_4 = arith.constant 0 : index
    %3 = vector.load %arg3[%c0_3, %c0_4] : memref<1x64xf32, #tpu.memory_space<vmem>>, vector<1x64xf32>
    %4 = vector.broadcast %3 : vector<1x64xf32> to vector<8x64xf32>
    %5 = arith.addf %2, %4 : vector<8x64xf32>
    %c0_5 = arith.constant 0 : index
    %c0_6 = arith.constant 0 : index
    %6 = memref.load %arg6[%c0_5, %c0_6] : memref<1x1xf32, #tpu.memory_space<smem>>
    %7 = vector.broadcast %6 : f32 to vector<8x64xf32>
    %8 = arith.mulf %7, %5 : vector<8x64xf32>
    %9 = arith.negf %8 : vector<8x64xf32>
    %10 = math.exp %9 : vector<8x64xf32>
    %cst_7 = arith.constant 1.000000e+00 : f32
    %11 = vector.broadcast %cst_7 : f32 to vector<8x64xf32>
    %12 = arith.addf %11, %10 : vector<8x64xf32>
    %13 = arith.divf %11, %12 : vector<8x64xf32>
    %14 = arith.mulf %5, %13 : vector<8x64xf32>
    %c0_8 = arith.constant 0 : index
    %c0_9 = arith.constant 0 : index
    %15 = vector.load %arg4[%c0_8, %c0_9] : memref<64x128xf32, #tpu.memory_space<vmem>>, vector<64x128xf32>
    %cst_10 = arith.constant dense<0.000000e+00> : vector<8x128xf32>
    %16 = tpu.matmul %14, %15, %cst_10 {dimension_numbers = #tpu.dot_dimension_numbers<[1], [0], [0], [1], [0, 0, 1, 1], [], []>} : vector<8x64xf32>, vector<64x128xf32>, vector<8x128xf32> -> vector<8x128xf32>
    %c0_11 = arith.constant 0 : index
    %c0_12 = arith.constant 0 : index
    %17 = vector.load %arg5[%c0_11, %c0_12] : memref<1x128xf32, #tpu.memory_space<vmem>>, vector<1x128xf32>
    %18 = vector.broadcast %17 : vector<1x128xf32> to vector<8x128xf32>
    %19 = arith.addf %16, %18 : vector<8x128xf32>
    %c0_13 = arith.constant 0 : index
    %c0_14 = arith.constant 0 : index
    %20 = vector.load %arg7[%c0_13, %c0_14] : memref<8x128xf32, #tpu.memory_space<vmem>>, vector<8x128xf32>
    tpu.vector_store %arg7[%c0_13, %c0_14], %19 {strides = array<i32>} : memref<8x128xf32, #tpu.memory_space<vmem>>, vector<8x128xf32>,
    return
  }
  func.func @transform_0(%arg0: i32) -> (i32, i32) {
    %c0_i32 = arith.constant 0 : i32
    %c0_i32_0 = arith.constant 0 : i32
    return %arg0, %c0_i32 : i32, i32
  }
  func.func @transform_1(%arg0: i32) -> (i32, i32) {
    %c0_i32 = arith.constant 0 : i32
    %c0_i32_0 = arith.constant 0 : i32
    %c0_i32_1 = arith.constant 0 : i32
    return %c0_i32, %c0_i32_0 : i32, i32
  }
  func.func @transform_2(%arg0: i32) -> (i32, i32) {
    %c0_i32 = arith.constant 0 : i32
    %c0_i32_0 = arith.constant 0 : i32
    %c0_i32_1 = arith.constant 0 : i32
    return %c0_i32, %c0_i32_0 : i32, i32
  }
  func.func @transform_3(%arg0: i32) -> (i32, i32) {
    %c0_i32 = arith.constant 0 : i32
    %c0_i32_0 = arith.constant 0 : i32
    %c0_i32_1 = arith.constant 0 : i32
    return %c0_i32, %c0_i32_0 : i32, i32
  }
  func.func @transform_4(%arg0: i32) -> (i32, i32) {
    %c0_i32 = arith.constant 0 : i32
    %c0_i32_0 = arith.constant 0 : i32
    %c0_i32_1 = arith.constant 0 : i32
    return %c0_i32, %c0_i32_0 : i32, i32
  }
  func.func @transform_5(%arg0: i32) -> (i32, i32) {
    %c0_i32 = arith.constant 0 : i32
    %c0_i32_0 = arith.constant 0 : i32
    %c0_i32_1 = arith.constant 0 : i32
    return %c0_i32, %c0_i32_0 : i32, i32
  }
  func.func @transform_6(%arg0: i32) -> (i32, i32) {
    %c0_i32 = arith.constant 0 : i32
    %c0_i32_0 = arith.constant 0 : i32
    return %arg0, %c0_i32 : i32, i32
  }
}

</mosaic_0001>

<bundles_post_ra>
// kernel: policy_forward.1
= control target key start
LH: loop header
LB: loop body
LE: loop exit
PB: predicated region body
PF: predicated region fallthrough
CT: control target
= control target key end

     0   :  { %12 = vsyncpa [#allocation4], 0  ;;  %s482_s0 = inlined_call_operand.hbm [shape: f32[8,27], index: 0, kind: input, shape index: {}]   ;;  %s483_s1 = inlined_call_operand.hbm [shape: f32[27,64], index: 1, kind: input, shape index: {}]   ;;  %s484_s2 = inlined_call_operand.vmem [shape: f32[1,64], index: 2, kind: input, shape index: {}]   ;;  %s485_s3 = inlined_call_operand.hbm [shape: f32[64,128], index: 3, kind: input, shape index: {}]   ;;  %s486_s4 = inlined_call_operand.vmem [shape: f32[1,128], index: 4, kind: input, shape index: {}]   ;;  %s487_s5 = inlined_call_operand.<no memory space> [shape: f32[1,1], index: 5, kind: input, shape index: {}]   ;;  %s488_s6 = inlined_call_operand.hbm [shape: f32[8,128], index: 6, kind: output, shape index: {}]  }
   0x1   :  { %13 = vsyncpa [#allocation7], 0 }
   0x2   :  { %14 = vsyncpa [#allocation5], 0  ;;  %s418_s21 = smov [#allocation6]  }
   0x3   :  { %s30_s22 = sshll.u32 %s418_s21, 4  ;;  %s31_s22 = int_to_ptr.vmem [resolvable:$true] %s30_s22 }
   0x4   :  { %s340_s23 = scalar_lea.vmem %s31_s22, 512  ;;  %p345_p1 = scmp.lt.s32.totalorder %s31_s22, %s31_s22 }
   0x5   :  { %p341_p0 = scmp.ne.s32.totalorder %s31_s22, %s340_s23  ;;  %p346_p2 = scmp.lt.s32.totalorder %s340_s23, %s340_s23 }
   0x7   :  { %p347_p3 = por %p346_p2, %p345_p1 }
   0x9   :  { %p348_p4 = pnand %p347_p3, %p341_p0 }
   0xb   :  { %351 = shalt.err (!%p348_p4)
}
   0xc   :  { %s419_s24 = smov 128   ;;  %s420_s25 = smov 8  }
   0xd   :  { %36 = dma.hbm_to_vmem [thread:$0]  %s483_s1, 512, %s31_s22, [#allocation7], %s419_s24, %s419_s24, %s420_s25  }
   0xe   :  { %s421_s28 = smov [#allocation3]   ;;  %s422_s30 = smov [#allocation8]  }
   0xf   :  { %s21_s29 = sshll.u32 %s421_s28, 4  ;;  %s44_s7 = sshll.u32 %s422_s30, 4  ;;  %s22_s29 = int_to_ptr.vmem [resolvable:$true] %s21_s29  ;;  %s45_s7 = int_to_ptr.vmem [resolvable:$true] %s44_s7 }
  0x10   :  { %s360_s8 = scalar_lea.vmem %s22_s29, 128  ;;  %p365_p6 = scmp.lt.s32.totalorder %s22_s29, %s22_s29 }
  0x11   :  { %p361_p5 = scmp.ne.s32.totalorder %s22_s29, %s360_s8  ;;  %p366_p7 = scmp.lt.s32.totalorder %s360_s8, %s360_s8 }
  0x13   :  { %p367_p8 = por %p366_p7, %p365_p6 }
  0x15   :  { %p368_p9 = pnand %p367_p8, %p361_p5 }
  0x17   :  { %371 = shalt.err (!%p368_p9)
}
  0x18   :  { %24 = dma.hbm_to_vmem [thread:$0]  %s482_s0, 128, %s22_s29, [#allocation4]  }
  0x19   :  { %s380_s11 = scalar_lea.vmem %s45_s7, 1024  ;;  %p385_p11 = scmp.lt.s32.totalorder %s45_s7, %s45_s7 }
  0x1a   :  { %p381_p10 = scmp.ne.s32.totalorder %s45_s7, %s380_s11  ;;  %p386_p12 = scmp.lt.s32.totalorder %s380_s11, %s380_s11 }
  0x1c   :  { %p387_p13 = por %p386_p12, %p385_p11 }
  0x1e   :  { %p388_p0 = pnand %p387_p13, %p381_p10 }
  0x20   :  { %391 = shalt.err (!%p388_p0)
}
  0x21   :  { %50 = dma.hbm_to_vmem [thread:$0]  %s485_s3, 1024, %s45_s7, [#allocation7], %s419_s24, %s419_s24, %s420_s25  }
  0x22   :  { %412 = dma.done.wait [#allocation4], 128  }
  0x23   :  { %413 = vsyncadd [#allocation4], 4294967168 }
  0x24   :  { %414 = dma.done.wait [#allocation7], 1536  }
  0x25   :  { %415 = vsyncadd [#allocation7], 4294965760  ;;  %v423_v0 = vmov 0.0   ;;  %vm424_vm0 = vmmov 0   ;;  %vm80_vm1 = vcmask 1042432   ;;  %v67_v2 = vld [vmem:[#allocation6 + $0x10] sm:$0xff]  ;;  %v155_v16 = vstv %s487_s5 }
  0x26   :  { %290 = vmatprep.subr.mxu0 %v423_v0  ;;  %298 = vmatprep.mubr.msk.f32.mxu0 %vm424_vm0, %v423_v0  ;;  %v68_v1 = vld [vmem:[#allocation6 + $0x18] sm:$0x7]  ;;  %v66_v3 = vld [vmem:[#allocation6 + $0x8] sm:$0xff]  ;;  %v65_v4 = vld [vmem:[#allocation6] sm:$0xff]  ;;  %vm76_vm2 = vcmask 220160   ;;  %vm179_vm3 = vcmask 523264  }
  0x27   :  { %301 = vmatprep.subr.mxu1 %v423_v0  ;;  %317 = vmatprep.mubr.msk.f32.mxu1 %vm424_vm0, %v423_v0  ;;  %v64_v5 = vld [vmem:[#allocation3] sm:$0xff]  ;;  %v170_v7 = vld [vmem:[#allocation8 + $0x30] sm:$0xff]  ;;  %v169_v8 = vld [vmem:[#allocation8 + $0x28] sm:$0xff] }
  0x28   :  { %291 = vmatpush3.msk.msra.mxu0 %vm80_vm1, %v68_v1  ;;  %v171_v6 = vld [vmem:[#allocation8 + $0x38] sm:$0xff]  ;;  %v168_v9 = vld [vmem:[#allocation8 + $0x20] sm:$0xff]  ;;  %v166_v11 = vld [vmem:[#allocation8 + $0x10] sm:$0xff] }
  0x29   :  { %292 = vmatprep.subr.mxu0 %v423_v0  ;;  %302 = vmatpush3.msra.mxu1 %v171_v6  ;;  %v167_v10 = vld [vmem:[#allocation8 + $0x18] sm:$0xff]  ;;  %v165_v12 = vld [vmem:[#allocation8 + $0x8] sm:$0xff]  ;;  %v164_v13 = vld [vmem:[#allocation8] sm:$0xff] }
  0x2a   :  { %293 = vmatpush3.msra.mxu0 %v67_v2  ;;  %303 = vmatprep.subr.mxu1 %v423_v0  ;;  %v270_v14 = vld [vmem:[%s484_s2] ss:$0 sm:$0xff]  ;;  %s425_s2 = smov [#allocation9]  }
  0x2b   :  { %294 = vmatprep.subr.mxu0 %v423_v0  ;;  %304 = vmatpush3.msra.mxu1 %v170_v7  ;;  %v274_v25 = vld [vmem:[%s486_s4] ss:$0 sm:$0xff]  ;;  %s260_s17 = sshll.u32 %s425_s2, 4  ;;  %s261_s17 = int_to_ptr.vmem [resolvable:$true] %s260_s17 }
  0x2c   :  { %295 = vmatpush3.msra.mxu0 %v66_v3  ;;  %305 = vmatprep.subr.mxu1 %v423_v0  ;;  %s392_s5 = scalar_lea.vmem %s261_s17, 128  ;;  %p397_p2 = scmp.lt.s32.totalorder %s261_s17, %s261_s17 }
  0x2d   :  { %296 = vmatprep.subr.mxu0 %v423_v0  ;;  %306 = vmatpush3.msra.mxu1 %v169_v8  ;;  %p393_p1 = scmp.ne.s32.totalorder %s261_s17, %s392_s5  ;;  %p398_p3 = scmp.lt.s32.totalorder %s392_s5, %s392_s5 }
  0x2e   :  { %297 = vmatpush3.msra.mxu0 %v65_v4  ;;  %307 = vmatprep.subr.mxu1 %v423_v0 }
  0x2f   :  { %299 = vmatmul.mubr.msk.f32.vlgmr.msra.gmra.mxu0 %vm76_vm2, %v64_v5  ;;  %308 = vmatpush3.msra.mxu1 %v168_v9  ;;  %p399_p4 = por %p398_p3, %p397_p2 }
  0x30   :  { %309 = vmatprep.subr.mxu1 %v423_v0 }
  0x31   :  { %310 = vmatpush3.msra.mxu1 %v167_v10  ;;  %p400_p5 = pnand %p399_p4, %p393_p1 }
  0x32   :  { %311 = vmatprep.subr.mxu1 %v423_v0 }
  0x33   :  { %312 = vmatpush3.msra.mxu1 %v166_v11 }
  0x34   :  { %313 = vmatprep.subr.mxu1 %v423_v0 }
  0x35   :  { %314 = vmatpush3.msra.mxu1 %v165_v12 }
  0x36   :  { %315 = vmatprep.subr.mxu1 %v423_v0 }
  0x37   :  { %316 = vmatpush3.msra.mxu1 %v164_v13 }
  0xef   :  { %v150_v15 = vpop.f32.mrf.mxu0 }
  0xf0   :  { %v151_v17 = vadd.f32 %v270_v14, %v150_v15 }
  0xf1   :  { %v300_v18 = vpop.f32.mrf.mxu0 }
  0xf2   :  { %v156_v19 = vmul.f32 %v155_v16, %v151_v17 }
  0xf4   :  { %v273_v20 = vmul.f32 -1.442695, %v156_v19 }
  0xf6   :  { %328 = vpow2.f32 %v273_v20 }
 0x103   :  { %v329_v21 = vpop.eup %328 }
 0x104   :  { %v160_v22 = vadd.f32 1.0, %v329_v21 }
 0x106   :  { %330 = vrcp.f32 %v160_v22 }
 0x113   :  { %v331_v23 = vpop.eup %330 }
 0x114   :  { %v163_v24 = vmul.f32 %v331_v23, %v151_v17 }
 0x116   :  { %318 = vmatmul.mubr.msk.f32.vlgmr.msra.gmra.mxu1 %vm179_vm3, %v163_v24 }
 0x1d6   :  { %v249_v26 = vpop.f32.mrf.mxu1 }
 0x1d7   :  { %v250_v27 = vadd.f32 %v274_v25, %v249_v26 }
 0x1d8   :  { %v319_v28 = vpop.f32.mrf.mxu1 }
 0x1d9   :  { %253 = vst [vmem:[#allocation9] sm:$0xff] %v250_v27 }
 0x1da   :  { %403 = shalt.err (!%p400_p5)
}
 0x1db   :  { %263 = dma.vmem_to_hbm [thread:$0]  %s261_s17, 128, %s488_s6, [#allocation5]  }
 0x1dc   :  { %416 = dma.done.wait [#allocation5], 128  }
 0x1dd   :  { %417 = vsyncadd [#allocation5], 4294967168 }
 0x1de   :  { %267 = vsyncpa [#allocation4], 1 }
 0x1df   :  { %268 = vsyncpa [#allocation7], 1 }
 0x1e0   :  { %269 = vsyncpa [#allocation5], 1 }

</bundles_post_ra>
